<compile_context>
chip_gen: v6e
topology: v6e:2x2x1
jax: 0.10.0
libtpu: 0.0.40
codegen_flags: <defaults>
</compile_context>

<pallas_src>
import math

import jax
import jax.numpy as jnp
import numpy as np
from jax import lax
from jax.experimental import pallas as pl
from jax.experimental.pallas import tpu as pltpu

_EPS = 1e-5  # torch.nn.InstanceNorm2d default eps
_INV_SQRT2 = 1.0 / math.sqrt(2.0)


def _perm_eq_proj_kernel(x_ref, w1_ref, gb_ref, w2_ref, b2_ref, o_ref):
    # x_ref: (TB, Cin, S); o_ref: (TB, Cout, S); params are full (tiny) arrays.
    w1 = w1_ref[...]                      # (Ch, Cin)
    w2 = w2_ref[...]                      # (Cout, Ch)
    gb = gb_ref[...]                      # (Ch, 2) -> [gamma | beta]
    gamma = gb[:, 0:1]                    # (Ch, 1)
    beta = gb[:, 1:2]                     # (Ch, 1)
    b2 = b2_ref[...]                      # (Cout, 1)

    tb = x_ref.shape[0]
    inv_s = 1.0 / float(x_ref.shape[-1])

    def body(b, carry):
        x = x_ref[b]                                               # (Cin, S)

        # fc1: 1x1 conv == channel matmul.  Bias omitted: cancelled exactly
        # by the instance-norm mean subtraction below.
        h = jnp.dot(w1, x, preferred_element_type=jnp.float32)     # (Ch, S)

        # InstanceNorm2d (per sample, per channel over spatial, biased var)
        # folded with the affine params into one scale/shift:
        #   a = gamma * rsqrt(var + eps),  c = beta - mean * a,  hn = h*a + c
        mean = jnp.sum(h, axis=-1, keepdims=True) * inv_s          # (Ch, 1)
        ex2 = jnp.sum(h * h, axis=-1, keepdims=True) * inv_s       # (Ch, 1)
        var = ex2 - mean * mean
        a = lax.rsqrt(var + _EPS) * gamma
        c = beta - mean * a
        hn = h * a + c

        # Exact GELU (erf form) -- matches torch.nn.functional.gelu default.
        act = 0.5 * hn * (1.0 + lax.erf(hn * _INV_SQRT2))

        # fc2: 1x1 conv == channel matmul (+ bias).
        out = jnp.dot(w2, act, preferred_element_type=jnp.float32) + b2
        o_ref[b] = out.astype(o_ref.dtype)
        return carry

    lax.fori_loop(0, tb, body, 0)


def _cdiv(a, b):
    return -(-a // b)


def _tpu_config():
    """(vmem_limit_bytes, multi_core) derived from the attached chip.

    Falls back conservatively (64 MiB physical, single core) if the hardware
    cannot be identified, which is safe on every generation.
    """
    kind = ""
    try:
        dev = jax.devices()[0]
        kind = (getattr(dev, "device_kind", "") or "").lower()
    except Exception:
        pass

    vmem_phys = None
    try:
        vmem_phys = int(pltpu.get_tpu_info().vmem_capacity_bytes)
    except Exception:
        vmem_phys = None
    if not vmem_phys:
        big_vmem = any(t in kind for t in ("v2", "v3", "v4", "v5", "v6"))
        vmem_phys = (128 << 20) if big_vmem else (64 << 20)

    # 96 MiB on 128 MiB-class chips (v5e/v6e), 48 MiB on v7x (64 MiB physical).
    vmem_limit = min((3 * vmem_phys) // 4, 96 << 20)

    # Chips with 2 TensorCores sharing HBM benefit from >=2 even grid steps.
    multi_core = any(t in kind for t in ("v4", "v5p", "7"))
    return vmem_limit, multi_core


def _choose_block_batch(B, Cin, Cout, S, vmem_limit_bytes, multi_core):
    """Samples per grid step (tb) and padded batch size.

    tb is sized so the double-buffered f32 input/output blocks fit in ~half
    the scoped VMEM limit (headroom for weights, intermediates, compiler
    scratch).  On multi-core chips the grid-step count is forced >=2 and even
    so the 'parallel' batch axis load-balances across both TensorCores.
    """
    per_sample = 4 * S * 2 * (Cin + Cout)          # double-buffered f32 blocks
    budget = max(vmem_limit_bytes // 2, per_sample)
    tb = max(1, min(B, budget // per_sample))
    steps = _cdiv(B, tb)
    if multi_core:
        steps = max(steps, 2)
        if steps % 2:
            steps += 1
    tb = max(1, _cdiv(B, steps))
    b_pad = steps * tb
    return tb, b_pad


def perm_eq_projection(x, params, *, in_channels, permutation_invariant=False):
    """x: (B, C_total, H, W) float32, NCHW like the PyTorch module."""
    w1, b1, gamma, beta, w2, b2 = params
    del b1  # algebraically cancelled by InstanceNorm's mean subtraction
    batch = x.shape[0]

    if permutation_invariant:
        assert x.shape[1] % in_channels == 0, (
            "Total Number of Channels is not divisible by number of tokens")
        g = x.shape[1] // in_channels
        # 'b (g c) h w -> (b g) c h w'
        x = x.reshape(batch * g, in_channels, x.shape[2], x.shape[3])

    B, Cin, H, W = x.shape
    S = H * W
    Ch = w1.shape[0]
    Cout = w2.shape[0]

    x_flat = x.reshape(B, Cin, S)

    # Pack gamma/beta into one (Ch, 2) array; b2 as a column vector so it
    # broadcasts over the lane (S) axis.
    gb = jnp.stack([gamma, beta], axis=-1)      # (Ch, 2)
    b2c = b2.reshape(Cout, 1)

    vmem_limit, multi_core = _tpu_config()
    tb, b_pad = _choose_block_batch(B, Cin, Cout, S, vmem_limit, multi_core)

    if b_pad > B:
        # Padded (zero) samples are normalized independently (InstanceNorm is
        # per-sample), produce finite garbage, and are sliced off below.
        x_flat = jnp.pad(x_flat, ((0, b_pad - B), (0, 0), (0, 0)))

    grid = (b_pad // tb,)

    out = pl.pallas_call(
        _perm_eq_proj_kernel,
        out_shape=jax.ShapeDtypeStruct((b_pad, Cout, S), x.dtype),
        grid_spec=pltpu.PrefetchScalarGridSpec(
            num_scalar_prefetch=0,
            grid=grid,
            in_specs=[
                pl.BlockSpec((tb, Cin, S), lambda i: (i, 0, 0)),   # x
                pl.BlockSpec((Ch, Cin), lambda i: (0, 0)),         # w1
                pl.BlockSpec((Ch, 2), lambda i: (0, 0)),           # gamma|beta
                pl.BlockSpec((Cout, Ch), lambda i: (0, 0)),        # w2
                pl.BlockSpec((Cout, 1), lambda i: (0, 0)),         # b2
            ],
            out_specs=pl.BlockSpec((tb, Cout, S), lambda i: (i, 0, 0)),
        ),
        compiler_params=pltpu.CompilerParams(
            dimension_semantics=("parallel",),
            vmem_limit_bytes=vmem_limit,
        ),
    )(x_flat, w1, gb, w2, b2c)

    if b_pad > B:
        out = out[:B]
    out = out.reshape(B, Cout, H, W)

    if permutation_invariant:
        # '(b g) c h w -> b (g c) h w'
        out = out.reshape(batch, (B // batch) * Cout, H, W)
    return out


def _reference(x, params, *, in_channels, permutation_invariant=False):
    """Pure-JAX reference mirroring the PyTorch forward (keeps b1)."""
    w1, b1, gamma, beta, w2, b2 = params
    batch = x.shape[0]
    if permutation_invariant:
        g = x.shape[1] // in_channels
        x = x.reshape(batch * g, in_channels, x.shape[2], x.shape[3])
    # fc1 (1x1 conv)
    h = jnp.einsum('bchw,oc->bohw', x, w1) + b1[None, :, None, None]
    # InstanceNorm2d, affine, biased variance
    mean = h.mean(axis=(2, 3), keepdims=True)
    var = ((h - mean) ** 2).mean(axis=(2, 3), keepdims=True)
    hn = (h - mean) / jnp.sqrt(var + _EPS)
    hn = hn * gamma[None, :, None, None] + beta[None, :, None, None]
    # exact GELU
    act = 0.5 * hn * (1.0 + jax.lax.erf(hn / math.sqrt(2.0)))
    # fc2 (1x1 conv)
    out = jnp.einsum('bchw,oc->bohw', act, w2) + b2[None, :, None, None]
    if permutation_invariant:
        out = out.reshape(batch, -1, out.shape[2], out.shape[3])
    return out


def _init_params(key, in_channels, hidden_channels, out_channels):
    ks = jax.random.split(key, 6)
    # Deterministic synthetic init (shapes match Conv2d 1x1 kernels squeezed).
    w1 = jax.random.normal(ks[0], (hidden_channels, in_channels), jnp.float32) * 0.3
    b1 = jax.random.normal(ks[1], (hidden_channels,), jnp.float32) * 0.1
    gamma = 1.0 + 0.1 * jax.random.normal(ks[2], (hidden_channels,), jnp.float32)
    beta = 0.1 * jax.random.normal(ks[3], (hidden_channels,), jnp.float32)
    w2 = jax.random.normal(ks[4], (out_channels, hidden_channels), jnp.float32) * 0.3
    b2 = jax.random.normal(ks[5], (out_channels,), jnp.float32) * 0.1
    return (w1, b1, gamma, beta, w2, b2)


if __name__ == "__main__":
    key = jax.random.PRNGKey(0)
    k_x, k_p = jax.random.split(key)

    B, Cin, H, W = 2, 4, 16, 16
    hidden, Cout = 8, 6

    params = _init_params(k_p, Cin, hidden, Cout)
    x = jax.random.normal(k_x, (B, Cin, H, W), jnp.float32)

    out = perm_eq_projection(x, params, in_channels=Cin,
                             permutation_invariant=False)
    out = jax.block_until_ready(out)

    ref = _reference(x, params, in_channels=Cin, permutation_invariant=False)
    assert out.shape == (B, Cout, H, W)
    np.testing.assert_allclose(np.asarray(out), np.asarray(ref),
                               rtol=1e-4, atol=1e-4)

    # permutation_invariant path (channel groups handled via reshape glue)
    x_pi = jax.random.normal(k_x, (B, 2 * Cin, H, W), jnp.float32)
    out_pi = jax.block_until_ready(
        perm_eq_projection(x_pi, params, in_channels=Cin,
                           permutation_invariant=True))
    ref_pi = _reference(x_pi, params, in_channels=Cin,
                        permutation_invariant=True)
    np.testing.assert_allclose(np.asarray(out_pi), np.asarray(ref_pi),
                               rtol=1e-4, atol=1e-4)

    # Odd batch (exercises the padded-batch path instead of collapsing tb to 1)
    x_odd = jax.random.normal(k_x, (3, Cin, H, W), jnp.float32)
    out_odd = jax.block_until_ready(
        perm_eq_projection(x_odd, params, in_channels=Cin,
                           permutation_invariant=False))
    ref_odd = _reference(x_odd, params, in_channels=Cin,
                         permutation_invariant=False)
    np.testing.assert_allclose(np.asarray(out_odd), np.asarray(ref_odd),
                               rtol=1e-4, atol=1e-4)

    print("KERNEL_OK")
</pallas_src>

<mosaic_0001>
module attributes {stable_mosaic.version = 11 : i64} {
  func.func @_perm_eq_proj_kernel(%arg0: i32, %arg1: memref<2x4x256xf32, #tpu.memory_space<vmem>>, %arg2: memref<8x4xf32, #tpu.memory_space<vmem>>, %arg3: memref<8x2xf32, #tpu.memory_space<vmem>>, %arg4: memref<6x8xf32, #tpu.memory_space<vmem>>, %arg5: memref<6x1xf32, #tpu.memory_space<vmem>>, %arg6: memref<2x6x256xf32, #tpu.memory_space<vmem>>) attributes {dimension_semantics = [#tpu.dimension_semantics<parallel>], iteration_bounds = array<i64: 1>, scalar_prefetch = 0 : i64, scratch_operands = 0 : i64, tpu.core_type = #tpu.core_type<tc>, window_params = [{transform_indices = @transform_0, window_bounds = array<i64: 2, 4, 256>}, {pipeline_mode = #tpu.pipeline_mode<synchronous>, transform_indices = @transform_1, window_bounds = array<i64: 8, 4>}, {pipeline_mode = #tpu.pipeline_mode<synchronous>, transform_indices = @transform_2, window_bounds = array<i64: 8, 2>}, {pipeline_mode = #tpu.pipeline_mode<synchronous>, transform_indices = @transform_3, window_bounds = array<i64: 6, 8>}, {pipeline_mode = #tpu.pipeline_mode<synchronous>, transform_indices = @transform_4, window_bounds = array<i64: 6, 1>}, {transform_indices = @transform_5, window_bounds = array<i64: 2, 6, 256>}]} {
    %c0 = arith.constant 0 : index
    %c0_0 = arith.constant 0 : index
    %0 = vector.load %arg2[%c0, %c0_0] : memref<8x4xf32, #tpu.memory_space<vmem>>, vector<8x4xf32>
    %c0_1 = arith.constant 0 : index
    %c0_2 = arith.constant 0 : index
    %1 = vector.load %arg4[%c0_1, %c0_2] : memref<6x8xf32, #tpu.memory_space<vmem>>, vector<6x8xf32>
    %c0_3 = arith.constant 0 : index
    %c0_4 = arith.constant 0 : index
    %2 = vector.load %arg3[%c0_3, %c0_4] : memref<8x2xf32, #tpu.memory_space<vmem>>, vector<8x2xf32>
    %3 = vector.extract_strided_slice %2 {offsets = [0, 0], sizes = [8, 1], strides = [1, 1]} : vector<8x2xf32> to vector<8x1xf32>
    %4 = vector.extract_strided_slice %2 {offsets = [0, 1], sizes = [8, 1], strides = [1, 1]} : vector<8x2xf32> to vector<8x1xf32>
    %c0_5 = arith.constant 0 : index
    %c0_6 = arith.constant 0 : index
    %5 = vector.load %arg5[%c0_5, %c0_6] : memref<6x1xf32, #tpu.memory_space<vmem>>, vector<6x1xf32>
    %c0_i32 = arith.constant 0 : i32
    %c2_i32 = arith.constant 2 : i32
    %6 = arith.addi %c0_i32, %c2_i32 : i32
    %c1_i32 = arith.constant 1 : i32
    scf.for %arg7 = %c0_i32 to %6 step %c1_i32  : i32 {
      %7 = arith.index_cast %arg7 : i32 to index
      %c0_8 = arith.constant 0 : index
      %c0_9 = arith.constant 0 : index
      %8 = vector.load %arg1[%7, %c0_8, %c0_9] : memref<2x4x256xf32, #tpu.memory_space<vmem>>, vector<1x4x256xf32>
      %9 = vector.shape_cast %8 : vector<1x4x256xf32> to vector<4x256xf32>
      %cst = arith.constant dense<0.000000e+00> : vector<8x256xf32>
      %10 = tpu.matmul %0, %9, %cst {dimension_numbers = #tpu.dot_dimension_numbers<[1], [0], [0], [1], [0, 0, 1, 1], [], []>} : vector<8x4xf32>, vector<4x256xf32>, vector<8x256xf32> -> vector<8x256xf32>
      %cst_10 = arith.constant dense<0.000000e+00> : vector<8xf32>
      %11 = vector.multi_reduction <add>, %10, %cst_10 [1] : vector<8x256xf32> to vector<8xf32>
      %12 = vector.shape_cast %11 : vector<8xf32> to vector<8x1xf32>
      %cst_11 = arith.constant 3.906250e-03 : f32
      %13 = vector.broadcast %cst_11 : f32 to vector<8x1xf32>
      %14 = arith.mulf %12, %13 : vector<8x1xf32>
      %15 = arith.mulf %10, %10 : vector<8x256xf32>
      %cst_12 = arith.constant dense<0.000000e+00> : vector<8xf32>
      %16 = vector.multi_reduction <add>, %15, %cst_12 [1] : vector<8x256xf32> to vector<8xf32>
      %17 = vector.shape_cast %16 : vector<8xf32> to vector<8x1xf32>
      %cst_13 = arith.constant 3.906250e-03 : f32
      %18 = vector.broadcast %cst_13 : f32 to vector<8x1xf32>
      %19 = arith.mulf %17, %18 : vector<8x1xf32>
      %20 = arith.mulf %14, %14 : vector<8x1xf32>
      %21 = arith.subf %19, %20 : vector<8x1xf32>
      %cst_14 = arith.constant 9.99999974E-6 : f32
      %22 = vector.broadcast %cst_14 : f32 to vector<8x1xf32>
      %23 = arith.addf %21, %22 : vector<8x1xf32>
      %24 = math.rsqrt %23 : vector<8x1xf32>
      %25 = arith.mulf %24, %3 : vector<8x1xf32>
      %26 = arith.mulf %14, %25 : vector<8x1xf32>
      %27 = arith.subf %4, %26 : vector<8x1xf32>
      %28 = vector.broadcast %25 : vector<8x1xf32> to vector<8x256xf32>
      %29 = arith.mulf %10, %28 : vector<8x256xf32>
      %30 = vector.broadcast %27 : vector<8x1xf32> to vector<8x256xf32>
      %31 = arith.addf %29, %30 : vector<8x256xf32>
      %cst_15 = arith.constant 5.000000e-01 : f32
      %32 = vector.broadcast %cst_15 : f32 to vector<8x256xf32>
      %33 = arith.mulf %32, %31 : vector<8x256xf32>
      %cst_16 = arith.constant 0.707106769 : f32
      %34 = vector.broadcast %cst_16 : f32 to vector<8x256xf32>
      %35 = arith.mulf %31, %34 : vector<8x256xf32>
      %36 = math.erf %35 : vector<8x256xf32>
      %cst_17 = arith.constant 1.000000e+00 : f32
      %37 = vector.broadcast %cst_17 : f32 to vector<8x256xf32>
      %38 = arith.addf %37, %36 : vector<8x256xf32>
      %39 = arith.mulf %33, %38 : vector<8x256xf32>
      %cst_18 = arith.constant dense<0.000000e+00> : vector<6x256xf32>
      %40 = tpu.matmul %1, %39, %cst_18 {dimension_numbers = #tpu.dot_dimension_numbers<[1], [0], [0], [1], [0, 0, 1, 1], [], []>} : vector<6x8xf32>, vector<8x256xf32>, vector<6x256xf32> -> vector<6x256xf32>
      %41 = vector.broadcast %5 : vector<6x1xf32> to vector<6x256xf32>
      %42 = arith.addf %40, %41 : vector<6x256xf32>
      %43 = arith.index_cast %arg7 : i32 to index
      %c0_19 = arith.constant 0 : index
      %c0_20 = arith.constant 0 : index
      %44 = vector.load %arg6[%43, %c0_19, %c0_20] : memref<2x6x256xf32, #tpu.memory_space<vmem>>, vector<1x6x256xf32>
      %45 = vector.shape_cast %44 : vector<1x6x256xf32> to vector<6x256xf32>
      %46 = vector.shape_cast %42 : vector<6x256xf32> to vector<1x6x256xf32>
      tpu.vector_store %arg6[%43, %c0_19, %c0_20], %46 {strides = array<i32>} : memref<2x6x256xf32, #tpu.memory_space<vmem>>, vector<1x6x256xf32>,
    }
    %c2_i32_7 = arith.constant 2 : i32
    return
  }
  func.func @transform_0(%arg0: i32) -> (i32, i32, i32) {
    %c0_i32 = arith.constant 0 : i32
    %c0_i32_0 = arith.constant 0 : i32
    %c0_i32_1 = arith.constant 0 : i32
    return %arg0, %c0_i32, %c0_i32_0 : i32, i32, i32
  }
  func.func @transform_1(%arg0: i32) -> (i32, i32) {
    %c0_i32 = arith.constant 0 : i32
    %c0_i32_0 = arith.constant 0 : i32
    %c0_i32_1 = arith.constant 0 : i32
    return %c0_i32, %c0_i32_0 : i32, i32
  }
  func.func @transform_2(%arg0: i32) -> (i32, i32) {
    %c0_i32 = arith.constant 0 : i32
    %c0_i32_0 = arith.constant 0 : i32
    %c0_i32_1 = arith.constant 0 : i32
    return %c0_i32, %c0_i32_0 : i32, i32
  }
  func.func @transform_3(%arg0: i32) -> (i32, i32) {
    %c0_i32 = arith.constant 0 : i32
    %c0_i32_0 = arith.constant 0 : i32
    %c0_i32_1 = arith.constant 0 : i32
    return %c0_i32, %c0_i32_0 : i32, i32
  }
  func.func @transform_4(%arg0: i32) -> (i32, i32) {
    %c0_i32 = arith.constant 0 : i32
    %c0_i32_0 = arith.constant 0 : i32
    %c0_i32_1 = arith.constant 0 : i32
    return %c0_i32, %c0_i32_0 : i32, i32
  }
  func.func @transform_5(%arg0: i32) -> (i32, i32, i32) {
    %c0_i32 = arith.constant 0 : i32
    %c0_i32_0 = arith.constant 0 : i32
    %c0_i32_1 = arith.constant 0 : i32
    return %arg0, %c0_i32, %c0_i32_0 : i32, i32, i32
  }
}

</mosaic_0001>

<bundles_post_ra>
// kernel: tpu_custom_call.1
= control target key start
LH: loop header
LB: loop body
LE: loop exit
PB: predicated region body
PF: predicated region fallthrough
CT: control target
= control target key end

     0   :  { %s351_s26 = smov 0   ;;  %s372_s0 = inlined_call_operand.vmem [shape: f32[2,4,256], index: 0, kind: input, shape index: {}]   ;;  %s373_s1 = inlined_call_operand.vmem [shape: f32[8,4], index: 1, kind: input, shape index: {}]   ;;  %s374_s2 = inlined_call_operand.vmem [shape: f32[8,2], index: 2, kind: input, shape index: {}]   ;;  %s375_s3 = inlined_call_operand.vmem [shape: f32[6,8], index: 3, kind: input, shape index: {}]   ;;  %s376_s4 = inlined_call_operand.vmem [shape: f32[6,1], index: 4, kind: input, shape index: {}]   ;;  %s377_s5 = inlined_call_operand.vmem [shape: f32[2,6,256], index: 5, kind: output, shape index: {}]  }
   0x1   :  { %v334_v0 = vld [vmem:[%s373_s1] sm:$0xff] }
   0x2   :  { %v339_v1 = vld [vmem:[%s375_s3] sm:$0x3f] }
   0x3   :  { %v344_v2 = vld [vmem:[%s374_s2] sm:$0xff] }
   0x4   :  { %v349_v3 = vld [vmem:[%s376_s4] sm:$0x3f] }
   0x5 LB: > { %v297_v4 = vmov 0.0   ;;  %s265_s1 = sshll.u32 %s295_s26, 3  ;;  %vm40_vm0 = vcmask 1043456   ;;  %vm36_vm1 = vcmask 31744   ;;  %v298_v13 = vmov 0   ;;  %s300_s4 = smov 1   ;;  %s295_s26 = sphi %s351_s26, %s29_s26  }
   0x6   : > { %109 = vmatprep.mubr.f32.mxu0 %v297_v4  ;;  %234 = vmatprep.mubr.f32.mxu1 %v297_v4  ;;  %s32_s27 = scalar_lea.vmem %s372_s0, %s265_s1  ;;  %v299_v21 = vmov 1   ;;  %vm166_vm2 = vcmask 64512   ;;  %s266_s28 = sshll.u32 %s295_s26, 4 }
   0x7   : > { %v33_v5 = vld [vmem:[%s32_s27] sm:$0xff]  ;;  %279 = vset.pattern.permute.xlu1 %v298_v13  ;;  %280 = vset.pattern.permute.xlu0 %v299_v21  ;;  %s242_s6 = scalar_lea.vmem %s377_s5, %s266_s28  ;;  %s29_s26 = sadd.s32 1, %s295_s26  }
   0x8   : > { %v35_v6 = vcombine.high %v33_v5, %v33_v5  ;;  %p26_p0 = scmp.ge.s32.totalorder %s29_s26, 2  }
   0xa   : > { %260 = vmatprep.subr.msk.mxu0 %vm40_vm0, %v35_v6 }
   0xb   : > { %261 = vmatpush1.msk.msra.mxu0 %vm40_vm0, %v33_v5 }
   0xc   : > { %262 = vmatmul.mubr.msk.f32.vlgmr.msra.gmra.mxu0 %vm36_vm1, %v334_v0 }
  0xcc   : > { %v111_v7 = vpop.f32.mrf.mxu0 }
  0xcd   : > { %v120_v11 = vmul.f32 %v111_v7, %v111_v7 }
  0xce   : > { %v113_v8 = vpop.f32.mrf.mxu0 }
  0xcf   : > { %v121_v9 = vmul.f32 %v113_v8, %v113_v8  ;;  %v116_v10 = vadd.f32 %v113_v8, %v111_v7 }
  0xd1   : > { %117 = vadd.xlane.f32.xlu0 %v116_v10  ;;  %v122_v12 = vadd.f32 %v121_v9, %v120_v11 }
  0xd5   : > { %123 = vadd.xlane.f32.xlu0 %v122_v12 }
 0x15a   : > { %v118_v14 = vpop.xlane.xlu0 %117 }
 0x15b   : > { %v119_v15 = vmul.f32 0.00390625, %v118_v14 }
 0x15d   : > { %v126_v17 = vmul.f32 %v119_v15, %v119_v15 }
 0x15e   : > { %v124_v16 = vpop.xlane.xlu0 %123 }
 0x15f   : > { %v125_v18 = vmul.f32 0.00390625, %v124_v16 }
 0x161   : > { %v127_v19 = vsub.f32 %v125_v18, %v126_v17 }
 0x163   : > { %v128_v20 = vadd.f32 1e-05, %v127_v19 }
 0x165   : > { %283 = vrsqrt.f32 %v128_v20 }
 0x172   : > { %v284_v22 = vpop.eup %283 }
 0x173   : > { %v130_v23 = vmul.f32 %v284_v22, %v344_v2 }
 0x175   : > { %v131_v24 = vmul.f32 %v130_v23, %v119_v15 }
 0x177   : > { %133 = vrot.lane.b32.xlu1 %v131_v24, %s300_s4 }
 0x17b   : > { %139 = vperm.xlu1 %279, %v130_v23  }
 0x17f   : > { %163 = vperm.xlu1 %279, %v349_v3  }
 0x1e9   : > { %v134_v25 = vpop.permute.xlu1 %133 }
 0x1ea   : > { %v136_v26 = vsub.f32 %v344_v2, %v134_v25 }
 0x1ec   : > { %146 = vperm.xlu0 %280, %v136_v26  }
 0x1f0   : > { %281 = vset.pattern.permute.xlu0 %v298_v13 }
 0x1f6   : > { %v140_v27 = vpop.permute.xlu1 %139 }
 0x1f7   : > { %v142_v28 = vmul.f32 %v140_v27, %v111_v7  ;;  %v143_v29 = vmul.f32 %v140_v27, %v113_v8 }
 0x1fa   : > { %v164_v43 = vpop.permute.xlu1 %163 }
 0x267   : > { %v147_v30 = vpop.permute.xlu0 %146 }
 0x268   : > { %v149_v31 = vadd.f32 %v147_v30, %v142_v28  ;;  %v150_v32 = vadd.f32 %v147_v30, %v143_v29 }
 0x26a   : > { %v153_v33 = vmul.f32 0.70710677, %v149_v31  ;;  %v154_v34 = vmul.f32 0.70710677, %v150_v32  ;;  %v151_v37 = vmul.f32 0.5, %v149_v31  ;;  %v152_v39 = vmul.f32 0.5, %v150_v32 }
 0x26c   : > { %285 = verf.f32 %v153_v33 }
 0x26d   : > { %287 = verf.f32 %v154_v34 }
 0x279   : > { %v286_v35 = vpop.eup %285 }
 0x27a   : > { %v288_v36 = vpop.eup %287  ;;  %v157_v38 = vadd.f32 1.0, %v286_v35 }
 0x27b   : > { %v158_v40 = vadd.f32 1.0, %v288_v36 }
 0x27c   : > { %v159_v41 = vmul.f32 %v157_v38, %v151_v37 }
 0x27d   : > { %v160_v42 = vmul.f32 %v158_v40, %v152_v39 }
 0x27f   : > { %200 = vmatprep.subr.mxu1 %v160_v42 }
 0x280   : > { %201 = vmatpush1.msra.mxu1 %v159_v41 }
 0x281   : > { %263 = vmatmul.mubr.msk.f32.vlgmr.msra.gmra.mxu1 %vm166_vm2, %v339_v1 }
 0x341   : > { %v236_v44 = vpop.f32.mrf.mxu1 }
 0x342   : > { %v237_v45 = vadd.f32 %v236_v44, %v164_v43  ;;  %28 = sbr.rel (!%p26_p0) target bundleno = 5 (0x5), region = 49 }
 0x343   : > { %v238_v46 = vpop.f32.mrf.mxu1 }
 0x344   : > { %243 = vst [vmem:[%s242_s6] sm:$0x3f] %v237_v45  ;;  %v239_v47 = vadd.f32 %v238_v46, %v164_v43 }
 0x346   : > { %244 = vst [vmem:[%s242_s6 + $0x8] sm:$0x3f] %v239_v47 }

</bundles_post_ra>
